<compile_context>
chip_gen: v7x
topology: tpu7x:2x2x1
jax: 0.10.0
libtpu: 0.0.40
codegen_flags: <defaults>
</compile_context>

<pallas_src>
import functools

import jax
import jax.numpy as jnp
from jax.experimental import pallas as pl
from jax.experimental.pallas import tpu as pltpu

EPS = 1e-5
LANE = 128  # TPU lane width; all feature dims are padded to this at repack time.


def _round_up(n, m):
    return ((n + m - 1) // m) * m


def _bn_relu(h, gamma, beta, inv_b):
    """BatchNorm1d (training mode, biased var) + ReLU, single-pass statistics.

    The two reductions are independent -> both XLU reduces can issue
    back-to-back; the affine is fused into a single scale/shift FMA.
    """
    s1 = jnp.sum(h, axis=0, keepdims=True)
    s2 = jnp.sum(h * h, axis=0, keepdims=True)
    mu = s1 * inv_b
    var = jnp.maximum(s2 * inv_b - mu * mu, 0.0)      # guard tiny cancellation
    scale = gamma * jax.lax.rsqrt(var + EPS)           # rsqrt -> EUP slot
    shift = beta - mu * scale
    return jnp.maximum(h * scale + shift, 0.0)         # ReLU


def mlp_kernel(x_ref, p_ref, o_ref, *, n_hidden, in_rows, inv_b):
    """Fused MLP forward.  p_ref layout (all f32, LANE=128 lanes wide):
       rows [i*128 : (i+1)*128)          -> weight i, (in, out), zero padded
       rows [(n_hidden+1)*128 : end)     -> vectors: g0, be0, g1, be1, ..., b_final
    Zero padding is semantically inert: padded weight columns/rows are 0 and
    padded gammas are 0, so padded activations stay exactly 0 through BN/ReLU.
    """
    vec0 = (n_hidden + 1) * LANE
    vrows = p_ref.shape[0] - vec0
    vec = p_ref[vec0:vec0 + vrows, :]                  # (vrows, 128) f32, one load

    h = x_ref[...]
    for i in range(n_hidden):
        rows = in_rows if i == 0 else LANE
        w = p_ref[i * LANE: i * LANE + rows, :].astype(jnp.bfloat16)
        h = jnp.dot(h.astype(jnp.bfloat16), w, preferred_element_type=jnp.float32)
        h = _bn_relu(h, vec[2 * i: 2 * i + 1, :], vec[2 * i + 1: 2 * i + 2, :], inv_b)

    w = p_ref[n_hidden * LANE: (n_hidden + 1) * LANE, :].astype(jnp.bfloat16)
    b = vec[2 * n_hidden: 2 * n_hidden + 1, :]
    out = jnp.dot(h.astype(jnp.bfloat16), w, preferred_element_type=jnp.float32) + b
    o_ref[...] = out.astype(o_ref.dtype)               # lane-dense (B, 128) store


def prepare_params(params):
    """One-time repack of PyTorch-layout params into a single padded f32 slab."""
    params = list(params)
    n_hidden = (len(params) - 2) // 4

    ws, vecs = [], []
    idx = 0
    for _ in range(n_hidden):
        w, b, g, be = params[idx:idx + 4]
        idx += 4
        del b  # exact cancellation with training-mode BatchNorm mean subtraction
        ws.append(w)
        vecs += [g, be]
    w, b = params[idx:idx + 2]
    ws.append(w)
    vecs.append(b)

    assert all(max(w.shape) <= LANE for w in ws), \
        "TODO(synk): widths > 128 need a tiled (grid) variant"

    blocks = []
    for w in ws:                                        # (out, in) -> (128, 128)
        wt = w.T.astype(jnp.float32)
        blocks.append(jnp.pad(wt, ((0, LANE - wt.shape[0]), (0, LANE - wt.shape[1]))))

    vrows = _round_up(len(vecs), 8)
    vblock = jnp.zeros((vrows, LANE), jnp.float32)
    for j, v in enumerate(vecs):
        vblock = vblock.at[j, :v.shape[0]].set(v.astype(jnp.float32))

    slab = jnp.concatenate(blocks + [vblock], axis=0)   # ((n_hidden+1)*128+vrows, 128)
    out_dim = int(ws[-1].shape[0])
    return slab, n_hidden, out_dim


@functools.partial(jax.jit, static_argnums=(2, 3))
def mlp_forward(x, slab, n_hidden, out_dim):
    B, in_dim = x.shape
    in_rows = _round_up(in_dim, 8)
    if in_rows != in_dim:
        x = jnp.pad(x, ((0, 0), (0, in_rows - in_dim)))

    kernel = functools.partial(mlp_kernel, n_hidden=n_hidden, in_rows=in_rows,
                               inv_b=1.0 / B)
    vmem = pl.BlockSpec(memory_space=pltpu.MemorySpace.VMEM)
    out = pl.pallas_call(
        kernel,
        out_shape=jax.ShapeDtypeStruct((B, LANE), jnp.float32),
        in_specs=[vmem, vmem],
        out_specs=vmem,
    )(x, slab)
    return out[:, :out_dim]                             # strip lane padding outside


def make_params(key, input_size, arch, output_size, init_w=0.02):
    """Params in PyTorch layout, matching MLP.init_weights():
    weights ~ N(0, init_w), biases = 0 (Linear and BN), BN weight ~ N(0, init_w)."""
    sizes = [input_size] + [int(s) for s in arch.split("-")]
    keys = jax.random.split(key, 2 * len(sizes))
    ki = iter(keys)
    params = []
    for i in range(len(sizes) - 1):
        fan_in, fan_out = sizes[i], sizes[i + 1]
        w = init_w * jax.random.normal(next(ki), (fan_out, fan_in), jnp.float32)
        b = jnp.zeros((fan_out,), jnp.float32)
        g = init_w * jax.random.normal(next(ki), (fan_out,), jnp.float32)  # BN weight
        be = jnp.zeros((fan_out,), jnp.float32)                            # BN bias
        params += [w, b, g, be]
    w = init_w * jax.random.normal(next(ki), (output_size, sizes[-1]), jnp.float32)
    b = jnp.zeros((output_size,), jnp.float32)
    params += [w, b]
    return tuple(params)


def mlp_ref(x, params, dot_dtype=None):
    """Pure-JAX reference with the FULL original semantics (biases included,
    two-pass variance).  dot_dtype=jnp.bfloat16 mirrors the kernel's MXU input cast."""
    def dot(a, b):
        if dot_dtype is not None:
            a, b = a.astype(dot_dtype), b.astype(dot_dtype)
        return jnp.dot(a, b, preferred_element_type=jnp.float32)

    def bn_relu(h, g, be):
        mu = jnp.mean(h, axis=0, keepdims=True)
        var = jnp.mean((h - mu) ** 2, axis=0, keepdims=True)
        return jnp.maximum((h - mu) * (g * jax.lax.rsqrt(var + EPS)) + be, 0.0)

    (w1, b1, g1, be1, w2, b2, g2, be2, w3, b3) = params
    h = dot(x, w1.T) + b1
    h = bn_relu(h, g1[None, :], be1[None, :])
    h = dot(h, w2.T) + b2
    h = bn_relu(h, g2[None, :], be2[None, :])
    return dot(h, w3.T) + b3


if __name__ == "__main__":
    key = jax.random.PRNGKey(0)
    k_x, k_p = jax.random.split(key)

    B, input_size, output_size = 8, 16, 8
    arch = "32-32"

    x = jax.random.normal(k_x, (B, input_size), jnp.float32)
    params = make_params(k_p, input_size, arch, output_size)

    slab, n_hidden, out_dim = prepare_params(params)
    slab = jax.block_until_ready(slab)

    out = jax.block_until_ready(mlp_forward(x, slab, n_hidden, out_dim))
    assert out.shape == (B, output_size)

    # Tight check vs. a reference using the same bf16 MXU-input numerics
    # (validates packing / padding / fused BN logic).
    ref_bf16 = mlp_ref(x, params, dot_dtype=jnp.bfloat16)
    assert jnp.allclose(out, ref_bf16, atol=1e-5, rtol=1e-2)

    # Loose check vs. the full f32 reference (bf16 dot-input rounding only).
    ref_f32 = mlp_ref(x, params)
    assert jnp.allclose(out, ref_f32, atol=5e-4, rtol=5e-2)

    print("KERNEL_OK")
</pallas_src>

<mosaic_0001>
module attributes {stable_mosaic.version = 11 : i64} {
  func.func @mlp_kernel(%arg0: memref<8x16xf32, #tpu.memory_space<vmem>>, %arg1: memref<392x128xf32, #tpu.memory_space<vmem>>, %arg2: memref<8x128xf32, #tpu.memory_space<vmem>>) attributes {dimension_semantics = [], scalar_prefetch = 0 : i64, scratch_operands = 0 : i64, tpu.core_type = #tpu.core_type<tc>} {
    %c384 = arith.constant 384 : index
    %c0 = arith.constant 0 : index
    %0 = vector.load %arg1[%c384, %c0] : memref<392x128xf32, #tpu.memory_space<vmem>>, vector<8x128xf32>
    %c0_0 = arith.constant 0 : index
    %c0_1 = arith.constant 0 : index
    %1 = vector.load %arg0[%c0_0, %c0_1] : memref<8x16xf32, #tpu.memory_space<vmem>>, vector<8x16xf32>
    %c0_2 = arith.constant 0 : index
    %c0_3 = arith.constant 0 : index
    %2 = vector.load %arg1[%c0_2, %c0_3] : memref<392x128xf32, #tpu.memory_space<vmem>>, vector<16x128xf32>
    %3 = arith.truncf %2 : vector<16x128xf32> to vector<16x128xbf16>
    %4 = arith.truncf %1 : vector<8x16xf32> to vector<8x16xbf16>
    %cst = arith.constant dense<0.000000e+00> : vector<8x128xf32>
    %5 = tpu.matmul %4, %3, %cst {dimension_numbers = #tpu.dot_dimension_numbers<[1], [0], [0], [1], [0, 0, 1, 1], [], []>} : vector<8x16xbf16>, vector<16x128xbf16>, vector<8x128xf32> -> vector<8x128xf32>
    %6 = vector.extract_strided_slice %0 {offsets = [0, 0], sizes = [1, 128], strides = [1, 1]} : vector<8x128xf32> to vector<1x128xf32>
    %7 = vector.extract_strided_slice %0 {offsets = [1, 0], sizes = [1, 128], strides = [1, 1]} : vector<8x128xf32> to vector<1x128xf32>
    %cst_4 = arith.constant dense<0.000000e+00> : vector<128xf32>
    %8 = vector.multi_reduction <add>, %5, %cst_4 [0] : vector<8x128xf32> to vector<128xf32>
    %9 = vector.shape_cast %8 : vector<128xf32> to vector<1x128xf32>
    %10 = arith.mulf %5, %5 : vector<8x128xf32>
    %cst_5 = arith.constant dense<0.000000e+00> : vector<128xf32>
    %11 = vector.multi_reduction <add>, %10, %cst_5 [0] : vector<8x128xf32> to vector<128xf32>
    %12 = vector.shape_cast %11 : vector<128xf32> to vector<1x128xf32>
    %cst_6 = arith.constant 1.250000e-01 : f32
    %13 = vector.broadcast %cst_6 : f32 to vector<1x128xf32>
    %14 = arith.mulf %9, %13 : vector<1x128xf32>
    %cst_7 = arith.constant 1.250000e-01 : f32
    %15 = vector.broadcast %cst_7 : f32 to vector<1x128xf32>
    %16 = arith.mulf %12, %15 : vector<1x128xf32>
    %17 = arith.mulf %14, %14 : vector<1x128xf32>
    %18 = arith.subf %16, %17 : vector<1x128xf32>
    %cst_8 = arith.constant 0.000000e+00 : f32
    %19 = vector.broadcast %cst_8 : f32 to vector<1x128xf32>
    %20 = arith.maximumf %18, %19 : vector<1x128xf32>
    %cst_9 = arith.constant 9.99999974E-6 : f32
    %21 = vector.broadcast %cst_9 : f32 to vector<1x128xf32>
    %22 = arith.addf %20, %21 : vector<1x128xf32>
    %23 = math.rsqrt %22 : vector<1x128xf32>
    %24 = arith.mulf %6, %23 : vector<1x128xf32>
    %25 = arith.mulf %14, %24 : vector<1x128xf32>
    %26 = arith.subf %7, %25 : vector<1x128xf32>
    %27 = vector.broadcast %24 : vector<1x128xf32> to vector<8x128xf32>
    %28 = arith.mulf %5, %27 : vector<8x128xf32>
    %29 = vector.broadcast %26 : vector<1x128xf32> to vector<8x128xf32>
    %30 = arith.addf %28, %29 : vector<8x128xf32>
    %cst_10 = arith.constant 0.000000e+00 : f32
    %31 = vector.broadcast %cst_10 : f32 to vector<8x128xf32>
    %32 = arith.maximumf %30, %31 : vector<8x128xf32>
    %c128 = arith.constant 128 : index
    %c0_11 = arith.constant 0 : index
    %33 = vector.load %arg1[%c128, %c0_11] : memref<392x128xf32, #tpu.memory_space<vmem>>, vector<128x128xf32>
    %34 = arith.truncf %33 : vector<128x128xf32> to vector<128x128xbf16>
    %35 = arith.truncf %32 : vector<8x128xf32> to vector<8x128xbf16>
    %cst_12 = arith.constant dense<0.000000e+00> : vector<8x128xf32>
    %36 = tpu.matmul %35, %34, %cst_12 {dimension_numbers = #tpu.dot_dimension_numbers<[1], [0], [0], [1], [0, 0, 1, 1], [], []>} : vector<8x128xbf16>, vector<128x128xbf16>, vector<8x128xf32> -> vector<8x128xf32>
    %37 = vector.extract_strided_slice %0 {offsets = [2, 0], sizes = [1, 128], strides = [1, 1]} : vector<8x128xf32> to vector<1x128xf32>
    %38 = vector.extract_strided_slice %0 {offsets = [3, 0], sizes = [1, 128], strides = [1, 1]} : vector<8x128xf32> to vector<1x128xf32>
    %cst_13 = arith.constant dense<0.000000e+00> : vector<128xf32>
    %39 = vector.multi_reduction <add>, %36, %cst_13 [0] : vector<8x128xf32> to vector<128xf32>
    %40 = vector.shape_cast %39 : vector<128xf32> to vector<1x128xf32>
    %41 = arith.mulf %36, %36 : vector<8x128xf32>
    %cst_14 = arith.constant dense<0.000000e+00> : vector<128xf32>
    %42 = vector.multi_reduction <add>, %41, %cst_14 [0] : vector<8x128xf32> to vector<128xf32>
    %43 = vector.shape_cast %42 : vector<128xf32> to vector<1x128xf32>
    %cst_15 = arith.constant 1.250000e-01 : f32
    %44 = vector.broadcast %cst_15 : f32 to vector<1x128xf32>
    %45 = arith.mulf %40, %44 : vector<1x128xf32>
    %cst_16 = arith.constant 1.250000e-01 : f32
    %46 = vector.broadcast %cst_16 : f32 to vector<1x128xf32>
    %47 = arith.mulf %43, %46 : vector<1x128xf32>
    %48 = arith.mulf %45, %45 : vector<1x128xf32>
    %49 = arith.subf %47, %48 : vector<1x128xf32>
    %cst_17 = arith.constant 0.000000e+00 : f32
    %50 = vector.broadcast %cst_17 : f32 to vector<1x128xf32>
    %51 = arith.maximumf %49, %50 : vector<1x128xf32>
    %cst_18 = arith.constant 9.99999974E-6 : f32
    %52 = vector.broadcast %cst_18 : f32 to vector<1x128xf32>
    %53 = arith.addf %51, %52 : vector<1x128xf32>
    %54 = math.rsqrt %53 : vector<1x128xf32>
    %55 = arith.mulf %37, %54 : vector<1x128xf32>
    %56 = arith.mulf %45, %55 : vector<1x128xf32>
    %57 = arith.subf %38, %56 : vector<1x128xf32>
    %58 = vector.broadcast %55 : vector<1x128xf32> to vector<8x128xf32>
    %59 = arith.mulf %36, %58 : vector<8x128xf32>
    %60 = vector.broadcast %57 : vector<1x128xf32> to vector<8x128xf32>
    %61 = arith.addf %59, %60 : vector<8x128xf32>
    %cst_19 = arith.constant 0.000000e+00 : f32
    %62 = vector.broadcast %cst_19 : f32 to vector<8x128xf32>
    %63 = arith.maximumf %61, %62 : vector<8x128xf32>
    %c256 = arith.constant 256 : index
    %c0_20 = arith.constant 0 : index
    %64 = vector.load %arg1[%c256, %c0_20] : memref<392x128xf32, #tpu.memory_space<vmem>>, vector<128x128xf32>
    %65 = arith.truncf %64 : vector<128x128xf32> to vector<128x128xbf16>
    %66 = vector.extract_strided_slice %0 {offsets = [4, 0], sizes = [1, 128], strides = [1, 1]} : vector<8x128xf32> to vector<1x128xf32>
    %67 = arith.truncf %63 : vector<8x128xf32> to vector<8x128xbf16>
    %cst_21 = arith.constant dense<0.000000e+00> : vector<8x128xf32>
    %68 = tpu.matmul %67, %65, %cst_21 {dimension_numbers = #tpu.dot_dimension_numbers<[1], [0], [0], [1], [0, 0, 1, 1], [], []>} : vector<8x128xbf16>, vector<128x128xbf16>, vector<8x128xf32> -> vector<8x128xf32>
    %69 = vector.broadcast %66 : vector<1x128xf32> to vector<8x128xf32>
    %70 = arith.addf %68, %69 : vector<8x128xf32>
    %c0_22 = arith.constant 0 : index
    %c0_23 = arith.constant 0 : index
    %71 = vector.load %arg2[%c0_22, %c0_23] : memref<8x128xf32, #tpu.memory_space<vmem>>, vector<8x128xf32>
    tpu.vector_store %arg2[%c0_22, %c0_23], %70 {strides = array<i32>} : memref<8x128xf32, #tpu.memory_space<vmem>>, vector<8x128xf32>,
    return
  }
}

</mosaic_0001>

<bundles_post_ra>
// kernel: mlp_forward.1
= control target key start
LH: loop header
LB: loop body
LE: loop exit
PB: predicated region body
PF: predicated region fallthrough
CT: control target
= control target key end

     0   :  { %7 = vsyncpa [#allocation3], 0  ;;  %s563_s0 = inlined_call_operand.hbm [shape: f32[8,16], index: 0, kind: input, shape index: {}]   ;;  %s564_s1 = inlined_call_operand.hbm [shape: f32[392,128], index: 1, kind: input, shape index: {}]   ;;  %s565_s2 = inlined_call_operand.hbm [shape: f32[8,128], index: 2, kind: output, shape index: {}]  }
   0x1   :  { %8 = vsyncpa [#allocation6], 0 }
   0x2   :  { %9 = vsyncpa [#allocation4], 0  ;;  %s464_s9 = smov [#allocation2]   ;;  %s465_s11 = smov [#allocation5]  }
   0x3   :  { %s16_s10 = sshll.u32 %s464_s9, 4  ;;  %s25_s12 = sshll.u32 %s465_s11, 4  ;;  %s17_s10 = int_to_ptr.vmem [resolvable:$true] %s16_s10  ;;  %s486_s12 = int_to_ptr.vmem [resolvable:$true] %s25_s12 }
   0x4   :  { %s392_s15 = scalar_lea.hbm %s563_s0, 128 }
   0x5   :  { %p393_p0 = scmp.ne.s32.totalorder %s563_s0, %s392_s15  ;;  %p396_p1 = scmp.lt.u32.totalorder %s392_s15, %s563_s0 }
   0x7   :  { %p398_p2 = pnand %p396_p1, %p393_p0 }
   0x9   :  { %401 = shalt.err (!%p398_p2)
}
   0xa   :  { %s402_s20 = scalar_lea.vmem %s17_s10, 128  ;;  %p407_p4 = scmp.lt.s32.totalorder %s17_s10, %s17_s10 }
   0xb   :  { %p403_p3 = scmp.ne.s32.totalorder %s17_s10, %s402_s20  ;;  %p408_p5 = scmp.lt.s32.totalorder %s402_s20, %s402_s20 }
   0xd   :  { %p409_p6 = por %p408_p5, %p407_p4 }
   0xf   :  { %p410_p7 = pnand %p409_p6, %p403_p3 }
  0x11   :  { %413 = shalt.err (!%p410_p7)
}
  0x12   :  { %19 = dma.hbm_to_vmem [thread:$0]  %s563_s0, 128, %s17_s10, [#allocation3]  }
  0x13   :  { %s414_s25 = scalar_lea.hbm %s564_s1, 6272 }
  0x14   :  { %p415_p8 = scmp.ne.s32.totalorder %s564_s1, %s414_s25  ;;  %p418_p9 = scmp.lt.u32.totalorder %s414_s25, %s564_s1 }
  0x16   :  { %p420_p10 = pnand %p418_p9, %p415_p8 }
  0x18   :  { %423 = shalt.err (!%p420_p10)
}
  0x19   :  { %s424_s30 = scalar_lea.vmem %s486_s12, 6272  ;;  %p429_p12 = scmp.lt.s32.totalorder %s486_s12, %s486_s12 }
  0x1a   :  { %p425_p11 = scmp.ne.s32.totalorder %s486_s12, %s424_s30  ;;  %p430_p13 = scmp.lt.s32.totalorder %s424_s30, %s424_s30 }
  0x1c   :  { %p431_p0 = por %p430_p13, %p429_p12 }
  0x1e   :  { %p432_p1 = pnand %p431_p0, %p425_p11 }
  0x20   :  { %435 = shalt.err (!%p432_p1)
}
  0x21   :  { %s466_s0 = smov 128   ;;  %s467_s3 = smov 8  }
  0x22   :  { %31 = dma.hbm_to_vmem [thread:$0]  %s564_s1, 6272, %s486_s12, [#allocation6], %s466_s0, %s466_s0, %s467_s3  }
  0x23   :  { %458 = dma.done.wait [#allocation3], 128  }
  0x24   :  { %459 = vsyncadd [#allocation3], 4294967168 }
  0x25   :  { %460 = dma.done.wait [#allocation6], 6272  }
  0x26   :  { %461 = vsyncadd [#allocation6], 4294961024  ;;  %v468_v0 = vmov 0.0   ;;  %vm469_vm0 = vmmov 0   ;;  %v41_v1 = vld [vmem:[#allocation5] sm:$0xff]  ;;  %v42_v2 = vld [vmem:[#allocation5 + $0x8] sm:$0xff]  ;;  %v115_v53 = vlaneseq }
  0x27   :  { %335 = vmatprep.subr.bf16.mxu0 %v468_v0  ;;  %337 = vmatprep.mubr.msk.bf16.mxu0 %vm469_vm0, %v468_v0  ;;  %v40_v3 = vld [vmem:[#allocation2] sm:$0xff]  ;;  %v43_v4 = vpack.c.bf16 %v42_v2, %v41_v1  ;;  %vm45_vm1 = vcmask 130048   ;;  %v126_v6 = vld [vmem:[#allocation5 + $0x80] sm:$0xff]  ;;  %v127_v7 = vld [vmem:[#allocation5 + $0x88] sm:$0xff]  ;;  %s470_s1 = smov [#allocation7]  }
  0x28   :  { %341 = vmatprep.subr.bf16.mxu1 %v468_v0  ;;  %357 = vmatprep.mubr.msk.bf16.mxu1 %vm469_vm0, %v468_v0  ;;  %v44_v5 = vpack.c.bf16 %v40_v3, %v40_v3  ;;  %v142_v8 = vpack.c.bf16 %v127_v7, %v126_v6  ;;  %v128_v9 = vld [vmem:[#allocation5 + $0x90] sm:$0xff]  ;;  %v129_v10 = vld [vmem:[#allocation5 + $0x98] sm:$0xff]  ;;  %v130_v12 = vld [vmem:[#allocation5 + $0xa0] sm:$0xff]  ;;  %v530_v54 = vshrl.u32 %v115_v53, 7  ;;  %s304_s6 = sshll.u32 %s470_s1, 4  ;;  %s305_s6 = int_to_ptr.vmem [resolvable:$true] %s304_s6 }
  0x29   :  { %336 = vmatpush3.bf16.msra.mxu0 %v43_v4  ;;  %v143_v11 = vpack.c.bf16 %v129_v10, %v128_v9  ;;  %v131_v13 = vld [vmem:[#allocation5 + $0xa8] sm:$0xff]  ;;  %v132_v15 = vld [vmem:[#allocation5 + $0xb0] sm:$0xff]  ;;  %v133_v16 = vld [vmem:[#allocation5 + $0xb8] sm:$0xff]  ;;  %s436_s7 = scalar_lea.vmem %s305_s6, 128  ;;  %p441_p3 = scmp.lt.s32.totalorder %s305_s6, %s305_s6 }
  0x2a   :  { %361 = vmatprep.subr.bf16.mxu0 %v468_v0  ;;  %342 = vmatpush3.bf16.msra.mxu1 %v142_v8  ;;  %v144_v14 = vpack.c.bf16 %v131_v13, %v130_v12  ;;  %v145_v17 = vpack.c.bf16 %v133_v16, %v132_v15  ;;  %v134_v18 = vld [vmem:[#allocation5 + $0xc0] sm:$0xff]  ;;  %v135_v19 = vld [vmem:[#allocation5 + $0xc8] sm:$0xff]  ;;  %v136_v21 = vld [vmem:[#allocation5 + $0xd0] sm:$0xff]  ;;  %v117_v58 = vsub.s32 0, %v530_v54  ;;  %v122_v62 = vsub.s32 1, %v530_v54  ;;  %p437_p2 = scmp.ne.s32.totalorder %s305_s6, %s436_s7  ;;  %p442_p4 = scmp.lt.s32.totalorder %s436_s7, %s436_s7 }
  0x2b   :  { %343 = vmatprep.subr.bf16.mxu1 %v468_v0  ;;  %v146_v20 = vpack.c.bf16 %v135_v19, %v134_v18  ;;  %v137_v22 = vld [vmem:[#allocation5 + $0xd8] sm:$0xff]  ;;  %v138_v24 = vld [vmem:[#allocation5 + $0xe0] sm:$0xff]  ;;  %v139_v25 = vld [vmem:[#allocation5 + $0xe8] sm:$0xff] }
  0x2c   :  { %338 = vmatmul.mubr.msk.bf16.vlgmr.msra.gmra.mrb[0].mxu0 %vm45_vm1, %v44_v5  ;;  %v147_v23 = vpack.c.bf16 %v137_v22, %v136_v21  ;;  %v148_v26 = vpack.c.bf16 %v139_v25, %v138_v24  ;;  %v140_v27 = vld [vmem:[#allocation5 + $0xf0] sm:$0xff]  ;;  %v141_v28 = vld [vmem:[#allocation5 + $0xf8] sm:$0xff]  ;;  %v532_v55 = vld [vmem:[#allocation5 + $0x180] sm:$0xff]  ;;  %p443_p5 = por %p442_p4, %p441_p3 }
  0x2d   :  { %377 = vmatprep.mubr.msk.bf16.mxu0 %vm469_vm0, %v468_v0  ;;  %v149_v29 = vpack.c.bf16 %v141_v28, %v140_v27  ;;  %v228_v6 = vld [vmem:[#allocation5 + $0x100] sm:$0xff]  ;;  %v229_v7 = vld [vmem:[#allocation5 + $0x108] sm:$0xff]  ;;  %v230_v9 = vld [vmem:[#allocation5 + $0x110] sm:$0xff] }
  0x2e   :  { %344 = vmatpush3.bf16.msra.mxu1 %v143_v11  ;;  %v244_v8 = vpack.c.bf16 %v229_v7, %v228_v6  ;;  %v231_v10 = vld [vmem:[#allocation5 + $0x118] sm:$0xff]  ;;  %v232_v12 = vld [vmem:[#allocation5 + $0x120] sm:$0xff]  ;;  %v233_v13 = vld [vmem:[#allocation5 + $0x128] sm:$0xff]  ;;  %p444_p6 = pnand %p443_p5, %p437_p2 }
  0x2f   :  { %345 = vmatprep.subr.bf16.mxu1 %v468_v0  ;;  %v245_v11 = vpack.c.bf16 %v231_v10, %v230_v9  ;;  %v234_v15 = vld [vmem:[#allocation5 + $0x130] sm:$0xff]  ;;  %v235_v16 = vld [vmem:[#allocation5 + $0x138] sm:$0xff]  ;;  %v236_v18 = vld [vmem:[#allocation5 + $0x140] sm:$0xff] }
  0x30   :  { %362 = vmatpush3.bf16.msra.mxu0 %v244_v8  ;;  %v237_v19 = vld [vmem:[#allocation5 + $0x148] sm:$0xff]  ;;  %v238_v21 = vld [vmem:[#allocation5 + $0x150] sm:$0xff]  ;;  %v239_v22 = vld [vmem:[#allocation5 + $0x158] sm:$0xff] }
  0x31   :  { %363 = vmatprep.subr.bf16.mxu0 %v468_v0  ;;  %v240_v24 = vld [vmem:[#allocation5 + $0x160] sm:$0xff]  ;;  %v241_v25 = vld [vmem:[#allocation5 + $0x168] sm:$0xff]  ;;  %v242_v27 = vld [vmem:[#allocation5 + $0x170] sm:$0xff] }
  0x32   :  { %346 = vmatpush3.bf16.msra.mxu1 %v144_v14  ;;  %v246_v14 = vpack.c.bf16 %v233_v13, %v232_v12  ;;  %v243_v28 = vld [vmem:[#allocation5 + $0x178] sm:$0xff] }
  0x33   :  { %347 = vmatprep.subr.bf16.mxu1 %v468_v0 }
  0x34   :  { %364 = vmatpush3.bf16.msra.mxu0 %v245_v11 }
  0x35   :  { %365 = vmatprep.subr.bf16.mxu0 %v468_v0 }
  0x36   :  { %348 = vmatpush3.bf16.msra.mxu1 %v145_v17  ;;  %v247_v17 = vpack.c.bf16 %v235_v16, %v234_v15 }
  0x37   :  { %349 = vmatprep.subr.bf16.mxu1 %v468_v0 }
  0x38   :  { %366 = vmatpush3.bf16.msra.mxu0 %v246_v14 }
  0x39   :  { %367 = vmatprep.subr.bf16.mxu0 %v468_v0 }
  0x3a   :  { %350 = vmatpush3.bf16.msra.mxu1 %v146_v20  ;;  %v248_v20 = vpack.c.bf16 %v237_v19, %v236_v18 }
  0x3b   :  { %351 = vmatprep.subr.bf16.mxu1 %v468_v0 }
  0x3c   :  { %368 = vmatpush3.bf16.msra.mxu0 %v247_v17 }
  0x3d   :  { %369 = vmatprep.subr.bf16.mxu0 %v468_v0 }
  0x3e   :  { %352 = vmatpush3.bf16.msra.mxu1 %v147_v23  ;;  %v249_v23 = vpack.c.bf16 %v239_v22, %v238_v21 }
  0x3f   :  { %353 = vmatprep.subr.bf16.mxu1 %v468_v0 }
  0x40   :  { %370 = vmatpush3.bf16.msra.mxu0 %v248_v20 }
  0x41   :  { %371 = vmatprep.subr.bf16.mxu0 %v468_v0 }
  0x42   :  { %354 = vmatpush3.bf16.msra.mxu1 %v148_v26  ;;  %v250_v26 = vpack.c.bf16 %v241_v25, %v240_v24 }
  0x43   :  { %355 = vmatprep.subr.bf16.mxu1 %v468_v0 }
  0x44   :  { %372 = vmatpush3.bf16.msra.mxu0 %v249_v23 }
  0x45   :  { %373 = vmatprep.subr.bf16.mxu0 %v468_v0 }
  0x46   :  { %356 = vmatpush3.bf16.msra.mxu1 %v149_v29  ;;  %v251_v29 = vpack.c.bf16 %v243_v28, %v242_v27 }
  0x48   :  { %374 = vmatpush3.bf16.msra.mxu0 %v250_v26 }
  0x49   :  { %375 = vmatprep.subr.bf16.mxu0 %v468_v0 }
  0x4c   :  { %376 = vmatpush3.bf16.msra.mxu0 %v251_v29 }
  0xff   :  { %v83_v30 = vpop.f32.mrb[0].mxu0 }
 0x100   :  { %v89_v31 = vrot.slane %v83_v30, 4  ;;  %v95_v32 = vmul.f32 %v83_v30, %v83_v30  ;;  %v339_v33 = vpop.f32.mrb[1].mxu0 }
 0x101   :  { %v86_v34 = vpop.f32.mrb[2].mxu0 }
 0x102   :  { %v90_v35 = vadd.f32 %v89_v31, %v83_v30  ;;  %v96_v36 = vrot.slane %v95_v32, 4  ;;  %v340_v37 = vpop.f32.mrb[3].mxu0 }
 0x104   :  { %v91_v38 = vrot.slane %v90_v35, 2  ;;  %v97_v39 = vadd.f32 %v96_v36, %v95_v32 }
 0x106   :  { %v92_v40 = vadd.f32 %v91_v38, %v90_v35  ;;  %v98_v41 = vrot.slane %v97_v39, 2 }
 0x108   :  { %v93_v42 = vrot.slane %v92_v40, 1  ;;  %v99_v43 = vadd.f32 %v98_v41, %v97_v39 }
 0x10a   :  { %v94_v44 = vadd.f32 %v93_v42, %v92_v40  ;;  %v100_v45 = vrot.slane %v99_v43, 1 }
 0x10c   :  { %v101_v46 = vadd.f32 %v100_v45, %v99_v43  ;;  %v102_v47 = vmul.f32 0.125, %v94_v44 }
 0x10e   :  { %v103_v48 = vmul.f32 0.125, %v101_v46  ;;  %v104_v49 = vmul.f32 %v102_v47, %v102_v47 }
 0x110   :  { %v105_v50 = vsub.f32 %v103_v48, %v104_v49 }
 0x112   :  { %v106_v51 = vmax.f32 %v105_v50, 0.0 }
 0x114   :  { %v107_v52 = vadd.f32 1e-05, %v106_v51 }
 0x116   :  { %388 = vrsqrt.f32 %v107_v52 }
 0x120   :  { %v389_v56 = vpop.eup %388 }
 0x121   :  { %v109_v57 = vmul.f32 %v389_v56, %v532_v55  ;;  %v219_v56 = vsub.s32 2, %v530_v54 }
 0x123   :  { %v110_v59 = vmul.f32 %v109_v57, %v102_v47  ;;  %v118_v60 = vrot.slane %v109_v57, %v117_v58 }
 0x125   :  { %v112_v61 = vrot.slane %v110_v59, 7  ;;  %v119_v1 = vmul.f32 %v118_v60, %v83_v30  ;;  %v224_v60 = vsub.s32 3, %v530_v54 }
 0x127   :  { %v114_v63 = vsub.f32 %v532_v55, %v112_v61 }
 0x129   :  { %v123_v2 = vrot.slane %v114_v63, %v122_v62 }
 0x12b   :  { %v124_v3 = vadd.f32 %v123_v2, %v119_v1 }
 0x12d   :  { %v125_v4 = vmax.f32 %v124_v3, 0.0 }
 0x12f   :  { %v150_v5 = vpack.c.bf16 %v125_v4, %v125_v4  ;;  %v255_v4 = vsub.s32 4, %v530_v54 }
 0x131   :  { %358 = vmatmul.mubr.bf16.vlgmr.msra.gmra.mrb[0].mxu1 %v150_v5  ;;  %v256_v5 = vrot.slane %v532_v55, %v255_v4 }
 0x204   :  { %v185_v30 = vpop.f32.mrb[0].mxu1 }
 0x205   :  { %v191_v31 = vrot.slane %v185_v30, 4  ;;  %v197_v32 = vmul.f32 %v185_v30, %v185_v30  ;;  %v359_v33 = vpop.f32.mrb[1].mxu1 }
 0x206   :  { %v188_v34 = vpop.f32.mrb[2].mxu1 }
 0x207   :  { %v192_v35 = vadd.f32 %v191_v31, %v185_v30  ;;  %v198_v36 = vrot.slane %v197_v32, 4  ;;  %v360_v37 = vpop.f32.mrb[3].mxu1 }
 0x209   :  { %v193_v38 = vrot.slane %v192_v35, 2  ;;  %v199_v39 = vadd.f32 %v198_v36, %v197_v32 }
 0x20b   :  { %v194_v40 = vadd.f32 %v193_v38, %v192_v35  ;;  %v200_v41 = vrot.slane %v199_v39, 2 }
 0x20d   :  { %v195_v42 = vrot.slane %v194_v40, 1  ;;  %v201_v43 = vadd.f32 %v200_v41, %v199_v39 }
 0x20f   :  { %v196_v44 = vadd.f32 %v195_v42, %v194_v40  ;;  %v202_v0 = vrot.slane %v201_v43, 1 }
 0x211   :  { %v203_v45 = vadd.f32 %v202_v0, %v201_v43  ;;  %v204_v46 = vmul.f32 0.125, %v196_v44 }
 0x213   :  { %v205_v47 = vmul.f32 0.125, %v203_v45  ;;  %v206_v48 = vmul.f32 %v204_v46, %v204_v46 }
 0x215   :  { %v207_v49 = vsub.f32 %v205_v47, %v206_v48 }
 0x217   :  { %v208_v50 = vmax.f32 %v207_v49, 0.0 }
 0x219   :  { %v209_v51 = vadd.f32 1e-05, %v208_v50 }
 0x21b   :  { %390 = vrsqrt.f32 %v209_v51 }
 0x225   :  { %v391_v52 = vpop.eup %390 }
 0x226   :  { %v211_v53 = vmul.f32 %v391_v52, %v532_v55 }
 0x228   :  { %v212_v57 = vmul.f32 %v211_v53, %v204_v46  ;;  %v220_v59 = vrot.slane %v211_v53, %v219_v56 }
 0x22a   :  { %v214_v58 = vrot.slane %v212_v57, 7  ;;  %v221_v62 = vmul.f32 %v220_v59, %v185_v30 }
 0x22c   :  { %v216_v61 = vsub.f32 %v532_v55, %v214_v58 }
 0x22e   :  { %v225_v63 = vrot.slane %v216_v61, %v224_v60 }
 0x230   :  { %v226_v1 = vadd.f32 %v225_v63, %v221_v62 }
 0x232   :  { %v227_v2 = vmax.f32 %v226_v1, 0.0 }
 0x234   :  { %v252_v3 = vpack.c.bf16 %v227_v2, %v227_v2 }
 0x236   :  { %378 = vmatmul.mubr.bf16.vlgmr.msra.gmra.mrb[4].mxu0 %v252_v3 }
 0x309   :  { %v291_v6 = vpop.f32.mrb[4].mxu0 }
 0x30a   :  { %v292_v7 = vadd.f32 %v291_v6, %v256_v5  ;;  %v379_v8 = vpop.f32.mrb[5].mxu0 }
 0x30b   :  { %v294_v9 = vpop.f32.mrb[6].mxu0 }
 0x30c   :  { %297 = vst [vmem:[#allocation7] sm:$0xff] %v292_v7  ;;  %v380_v10 = vpop.f32.mrb[7].mxu0 }
 0x30d   :  { %447 = shalt.err (!%p444_p6)
}
 0x30e   :  { %s448_s10 = scalar_lea.hbm %s565_s2, 128 }
 0x30f   :  { %p449_p7 = scmp.ne.s32.totalorder %s565_s2, %s448_s10  ;;  %p452_p8 = scmp.lt.u32.totalorder %s448_s10, %s565_s2 }
 0x311   :  { %p454_p9 = pnand %p452_p8, %p449_p7 }
 0x313   :  { %457 = shalt.err (!%p454_p9)
}
 0x314   :  { %307 = dma.vmem_to_hbm [thread:$0]  %s305_s6, 128, %s565_s2, [#allocation4]  }
 0x315   :  { %462 = dma.done.wait [#allocation4], 128  }
 0x316   :  { %463 = vsyncadd [#allocation4], 4294967168 }
 0x317   :  { %311 = vsyncpa [#allocation3], 1 }
 0x318   :  { %312 = vsyncpa [#allocation6], 1 }
 0x319   :  { %313 = vsyncpa [#allocation4], 1 }

</bundles_post_ra>
